<compile_context>
chip_gen: v5e
topology: v5e:2x2
jax: 0.10.0
libtpu: 0.0.40
codegen_flags: <defaults>
</compile_context>

<pallas_src>
import jax
import jax.numpy as jnp
from jax.experimental import pallas as pl
from jax.experimental.pallas import tpu as pltpu


# ----------------------------------------------------------------------------
# Fused BatchNorm(affine, folded running stats) + ReLU kernel
# ----------------------------------------------------------------------------
def _bn_relu_kernel(x_ref, scale_ref, bias_ref, o_ref):
    # x_ref     : (1, C, hw_tile)  -- lane-dense spatial tile, channels on sublanes
    # scale_ref : (C, 1)           -- gamma / sqrt(var + eps)
    # bias_ref  : (C, 1)           -- beta - mean * scale
    # o_ref     : (1, C, hw_tile)
    x = x_ref[0].astype(jnp.float32)
    y = x * scale_ref[...] + bias_ref[...]          # broadcast (C,1) over lanes
    o_ref[0] = jnp.maximum(y, 0.0).astype(o_ref.dtype)


def _pick_hw_tile(hw, c, dtype_bytes=4, max_block_bytes=2 << 20):
    """Largest lane-dense divisor of hw (multiple of 128) under a VMEM budget."""
    if hw % 128 != 0:
        return hw                     # full-extent block is always legal
    cap = (max_block_bytes // (dtype_bytes * max(c, 1))) // 128 * 128
    cap = max(cap, 128)
    tile = min(hw, cap)
    while hw % tile != 0:             # terminates: 128 divides hw
        tile -= 128
    return max(tile, 128)


def bn_relu(x_nchw, gamma, beta, running_mean, running_var, eps=1e-5):
    """y = ReLU(BatchNorm2d(x)) in inference mode, NCHW in / NCHW out."""
    B, C, H, W = x_nchw.shape
    HW = H * W

    # Fold BN running stats into a per-channel affine (done once, in f32).
    scale = (gamma / jnp.sqrt(running_var + eps)).astype(jnp.float32)
    bias = (beta - running_mean * scale).astype(jnp.float32)

    x_flat = x_nchw.reshape(B, C, HW)              # pure layout, no data movement
    hw_tile = _pick_hw_tile(HW, C, dtype_bytes=x_nchw.dtype.itemsize)
    grid = (B, HW // hw_tile)

    out_flat = pl.pallas_call(
        _bn_relu_kernel,
        out_shape=jax.ShapeDtypeStruct((B, C, HW), x_nchw.dtype),
        grid=grid,
        in_specs=[
            pl.BlockSpec((1, C, hw_tile), lambda b, t: (b, 0, t)),
            pl.BlockSpec((C, 1), lambda b, t: (0, 0)),
            pl.BlockSpec((C, 1), lambda b, t: (0, 0)),
        ],
        out_specs=pl.BlockSpec((1, C, hw_tile), lambda b, t: (b, 0, t)),
        compiler_params=pltpu.CompilerParams(
            dimension_semantics=("parallel", "parallel")),
    )(x_flat, scale.reshape(C, 1), bias.reshape(C, 1))

    return out_flat.reshape(B, C, H, W)


# ----------------------------------------------------------------------------
# Deterministic parameter setup + example run
# ----------------------------------------------------------------------------
def init_bn_params(key, c):
    kg, kb, km, kv = jax.random.split(key, 4)
    gamma = 1.0 + 0.1 * jax.random.normal(kg, (c,), jnp.float32)
    beta = 0.1 * jax.random.normal(kb, (c,), jnp.float32)
    mean = 0.1 * jax.random.normal(km, (c,), jnp.float32)
    var = 1.0 + 0.1 * jax.random.uniform(kv, (c,), jnp.float32)
    return gamma, beta, mean, var


def bn_relu_reference(x, gamma, beta, mean, var, eps=1e-5):
    xn = (x - mean[None, :, None, None]) / jnp.sqrt(var + eps)[None, :, None, None]
    y = xn * gamma[None, :, None, None] + beta[None, :, None, None]
    return jnp.maximum(y, 0.0)


if __name__ == "__main__":
    key = jax.random.PRNGKey(0)
    kx, kp = jax.random.split(key)
    B, C, H, W = 2, 4, 16, 16
    x = jax.random.normal(kx, (B, C, H, W), jnp.float32)
    gamma, beta, mean, var = init_bn_params(kp, C)

    out = bn_relu(x, gamma, beta, mean, var)
    jax.block_until_ready(out)

    assert out.shape == (B, C, H, W), out.shape
    assert out.dtype == jnp.float32

    ref = bn_relu_reference(x, gamma, beta, mean, var)
    assert jnp.allclose(out, ref, atol=1e-4, rtol=1e-4), "mismatch vs reference"

    print("KERNEL_OK")
</pallas_src>

<mosaic_0001>
module attributes {stable_mosaic.version = 11 : i64} {
  func.func @_bn_relu_kernel(%arg0: i32, %arg1: i32, %arg2: memref<1x4x256xf32, #tpu.memory_space<vmem>>, %arg3: memref<4x1xf32, #tpu.memory_space<vmem>>, %arg4: memref<4x1xf32, #tpu.memory_space<vmem>>, %arg5: memref<1x4x256xf32, #tpu.memory_space<vmem>>) attributes {dimension_semantics = [#tpu.dimension_semantics<parallel>, #tpu.dimension_semantics<parallel>], iteration_bounds = array<i64: 2, 1>, scalar_prefetch = 0 : i64, scratch_operands = 0 : i64, tpu.core_type = #tpu.core_type<tc>, window_params = [{transform_indices = @transform_0, window_bounds = array<i64: 1, 4, 256>}, {pipeline_mode = #tpu.pipeline_mode<synchronous>, transform_indices = @transform_1, window_bounds = array<i64: 4, 1>}, {pipeline_mode = #tpu.pipeline_mode<synchronous>, transform_indices = @transform_2, window_bounds = array<i64: 4, 1>}, {transform_indices = @transform_3, window_bounds = array<i64: 1, 4, 256>}]} {
    %c0 = arith.constant 0 : index
    %c0_0 = arith.constant 0 : index
    %c0_1 = arith.constant 0 : index
    %0 = vector.load %arg2[%c0, %c0_0, %c0_1] : memref<1x4x256xf32, #tpu.memory_space<vmem>>, vector<1x4x256xf32>
    %1 = vector.shape_cast %0 : vector<1x4x256xf32> to vector<4x256xf32>
    %c0_2 = arith.constant 0 : index
    %c0_3 = arith.constant 0 : index
    %2 = vector.load %arg3[%c0_2, %c0_3] : memref<4x1xf32, #tpu.memory_space<vmem>>, vector<4x1xf32>
    %3 = vector.broadcast %2 : vector<4x1xf32> to vector<4x256xf32>
    %4 = arith.mulf %1, %3 : vector<4x256xf32>
    %c0_4 = arith.constant 0 : index
    %c0_5 = arith.constant 0 : index
    %5 = vector.load %arg4[%c0_4, %c0_5] : memref<4x1xf32, #tpu.memory_space<vmem>>, vector<4x1xf32>
    %6 = vector.broadcast %5 : vector<4x1xf32> to vector<4x256xf32>
    %7 = arith.addf %4, %6 : vector<4x256xf32>
    %cst = arith.constant 0.000000e+00 : f32
    %8 = vector.broadcast %cst : f32 to vector<4x256xf32>
    %9 = arith.maximumf %7, %8 : vector<4x256xf32>
    %c0_6 = arith.constant 0 : index
    %c0_7 = arith.constant 0 : index
    %c0_8 = arith.constant 0 : index
    %10 = vector.load %arg5[%c0_6, %c0_7, %c0_8] : memref<1x4x256xf32, #tpu.memory_space<vmem>>, vector<1x4x256xf32>
    %11 = vector.shape_cast %10 : vector<1x4x256xf32> to vector<4x256xf32>
    %12 = vector.shape_cast %9 : vector<4x256xf32> to vector<1x4x256xf32>
    tpu.vector_store %arg5[%c0_6, %c0_7, %c0_8], %12 {strides = array<i32>} : memref<1x4x256xf32, #tpu.memory_space<vmem>>, vector<1x4x256xf32>,
    return
  }
  func.func @transform_0(%arg0: i32, %arg1: i32) -> (i32, i32, i32) {
    %c0_i32 = arith.constant 0 : i32
    %c0_i32_0 = arith.constant 0 : i32
    return %arg0, %c0_i32, %arg1 : i32, i32, i32
  }
  func.func @transform_1(%arg0: i32, %arg1: i32) -> (i32, i32) {
    %c0_i32 = arith.constant 0 : i32
    %c0_i32_0 = arith.constant 0 : i32
    %c0_i32_1 = arith.constant 0 : i32
    return %c0_i32, %c0_i32_0 : i32, i32
  }
  func.func @transform_2(%arg0: i32, %arg1: i32) -> (i32, i32) {
    %c0_i32 = arith.constant 0 : i32
    %c0_i32_0 = arith.constant 0 : i32
    %c0_i32_1 = arith.constant 0 : i32
    return %c0_i32, %c0_i32_0 : i32, i32
  }
  func.func @transform_3(%arg0: i32, %arg1: i32) -> (i32, i32, i32) {
    %c0_i32 = arith.constant 0 : i32
    %c0_i32_0 = arith.constant 0 : i32
    return %arg0, %c0_i32, %arg1 : i32, i32, i32
  }
}

</mosaic_0001>

<bundles_post_ra>
// kernel: tpu_custom_call.1
= control target key start
LH: loop header
LB: loop body
LE: loop exit
PB: predicated region body
PF: predicated region fallthrough
CT: control target
= control target key end

     0   :  { %8 = vsyncpa [#allocation3], 0  ;;  %s681_s0 = inlined_call_operand.hbm [shape: f32[2,4,256], index: 0, kind: input, shape index: {}]   ;;  %s682_s1 = inlined_call_operand.vmem [shape: f32[4,1], index: 1, kind: input, shape index: {}]   ;;  %s683_s2 = inlined_call_operand.vmem [shape: f32[4,1], index: 2, kind: input, shape index: {}]   ;;  %s684_s3 = inlined_call_operand.hbm [shape: f32[2,4,256], index: 3, kind: output, shape index: {}]  }
   0x1   :  { %10 = vsyncpa [#allocation3 + $0x1], 0 }
   0x2   :  { %11 = vsyncpa [#allocation4], 0 }
   0x3   :  { %13 = vsyncpa [#allocation4 + $0x1], 0  ;;  %s555_s12 = smov 0   ;;  %s557_s13 = smov 0  }
   0x4   :  { %s559_s14 = smov 0   ;;  %s561_s15 = smov 0  }
   0x5   :  { %s563_s16 = smov 0   ;;  %s565_s17 = smov 0  }
   0x6 LB: > { %s337_s18 = sadd.s32 4294967295, %s531_s17   ;;  %s338_s19 = sadd.s32 4294967294, %s531_s17   ;;  %s531_s17 = sphi %s565_s17, %s19_s17   ;;  %s527_s16 = sphi %s563_s16, %s693_s16   ;;  %s523_s15 = sphi %s561_s15, %s692_s15   ;;  %s519_s14 = sphi %s559_s14, %s691_s14   ;;  %s515_s13 = sphi %s557_s13, %s690_s13   ;;  %s511_s12 = sphi %s555_s12, %s689_s12  }
   0x7   : > { %s31_s20 = sadd.s32 1, %s527_s16  ;;  %s40_s21 = sadd.s32 1, %s519_s14 }
   0x8   : > { %p33_p0 = scmp.ge.s32.totalorder %s31_s20, 2  ;;  %p47_p1 = scmp.ne.s32.totalorder %s519_s14, %s515_s13 }
   0x9   : > { %p48_p2 = scmp.eq.s32.totalorder %s531_s17, 0  ;;  %p53_p3 = scmp.ne.s32.totalorder %s515_s13, %s511_s12 }
   0xa   : > { %s695_s20 = smov (%p33_p0, %s31_s20), 0  ;;  %p54_p5 = scmp.eq.s32.totalorder %s337_s18, 0 }
   0xb   : > { %p596_p4 = por %p48_p2, %p47_p1  ;;  %s35_s23 = ssub.s32 %s527_s16, %s695_s20 }
   0xc   : > { %p121_p6 = scmp.eq.s32.totalorder %s337_s18, 1  ;;  %p38_p7 = scmp.eq.s32.totalorder %s35_s23, 0 }
   0xd   : > { %p602_p8 = por %p54_p5, %p53_p3  ;;  %p127_p10 = scmp.eq.s32.totalorder %s338_s19, 1 }
   0xe   : > { %p606_p9 = por %p121_p6, %p47_p1  ;;  %p340_p12 = scmp.ge.s32.totalorder %s531_s17, 2 }
   0xf   : > { %s611_s26 = scalar_select %p38_p7, %s519_s14, %s40_s21  }
  0x10   : > { %p613_p11 = por %p127_p10, %p53_p3  ;;  %p366_p13 = scmp.lt.s32.totalorder %s531_s17, 2 }
  0x11   : > { %s153_s28 = sand.u32 1, %s519_s14   ;;  %s352_s30 = sshll.u32 %s527_s16, 3 }
  0x12   : > { %s341_s29 = sshll.u32 %s153_s28, 3  ;;  %s164_s6 = scalar_lea.hbm %s681_s0, %s352_s30 }
  0x13   : > { %s157_s7 = scalar_lea.vmem [#allocation2], %s341_s29  ;;  %s166_s9 = sshll.u32 %s164_s6, 4  ;;  %s167_s9 = int_to_ptr.hbm [resolvable:$true] %s166_s9 }
  0x14   : > { %s168_s8 = sshll.u32 %s157_s7, 4  ;;  %p359_p0 = pnand %p366_p13, %p596_p4  ;;  %s169_s8 = int_to_ptr.vmem [resolvable:$true] %s168_s8 }
  0x15   : > { %p344_p1 = scmp.ge.s32.totalorder %s531_s17, 1  ;;  %p173_p2 = scmp.lt.s32.totalorder %s531_s17, 3 }
  0x16   : > { %s154_s10 = scalar_lea.sflag [#allocation3], %s153_s28 }
  0x17   : > { %361 = dma.hbm_to_vmem [thread:$0]  (!%p359_p0), %s167_s9, 128, %s169_s8, %s154_s10  }
  0x18   : > { %p174_p3 = pnand %p344_p1, %p173_p2 }
  0x19   : > { %s629_s11 = sand.u32 (!%p174_p3), 1, %s515_s13  }
  0x1a   : > { %177 = sbr.rel (%p174_p3) target bundleno = 166 (0xa6), region = 32  ;;  %s345_s18 = sshll.u32 (!%p174_p3), %s629_s11, 3 }
  0x1b   : > { %s180_s19 = scalar_lea.sflag (!%p174_p3), [#allocation3], %s629_s11  ;;  %s183_s21 = scalar_lea.vmem (!%p174_p3), [#allocation2], %s345_s18 }
  0x1f   : > { %502 = dma.done.wait (%p602_p8), %s180_s19, 128  }
  0x20   : > { %504 = vsyncadd (%p602_p8), %s180_s19, 4294967168  ;;  %v533_v0 = vmov 0   ;;  %v210_v1 = vld [vmem:[%s682_s1] sm:$0xf]  ;;  %v534_v3 = vmov 839922192  }
  0x21   : > { %418 = vset.pattern.permute.xlu0 %v533_v0  ;;  %v221_v2 = vld [vmem:[%s683_s2] sm:$0xf]  ;;  %v216_v4 = vunpack.c.l.s4 %v534_v3  ;;  %s353_s24 = sshll.u32 %s523_s15, 3  ;;  %s206_s6 = scalar_lea.vmem [#allocation5], %s345_s18 }
  0x22   : > { %213 = vperm.xlu0 %418, %v210_v1   ;;  %v209_v8 = vld [vmem:[%s183_s21] sm:$0xff]  ;;  %s248_s5 = scalar_lea.hbm %s684_s3, %s353_s24  ;;  %s250_s7 = sshll.u32 %s206_s6, 4  ;;  %s251_s7 = int_to_ptr.vmem [resolvable:$true] %s250_s7 }
  0x23   : > { %v217_v6 = vunpack.c.0.s8 %v216_v4  ;;  %s252_s8 = sshll.u32 %s248_s5, 4  ;;  %s235_s9 = scalar_lea.sflag [#allocation4], %s629_s11  ;;  %s253_s8 = int_to_ptr.hbm [resolvable:$true] %s252_s8 }
  0x24   : > { %s463_s15 = sshra.s32 %s253_s8, 4  ;;  %s469_s22 = scalar_lea.hbm %s684_s3, 16  ;;  %s464_s15 = int_to_ptr.hbm [resolvable:$true] %s463_s15 }
  0x25   : > { %s465_s10 = scalar_lea.hbm %s464_s15, 8  ;;  %p470_p7 = scmp.lt.s32.totalorder %s464_s15, %s684_s3 }
  0x26   : > { %p466_p4 = scmp.ne.s32.totalorder %s464_s15, %s465_s10  ;;  %p471_p8 = scmp.lt.s32.totalorder %s469_s22, %s465_s10 }
  0x28   : > { %p467_p5 = pnand %p466_p4, %p606_p9  ;;  %p472_p10 = por %p471_p8, %p470_p7 }
  0x2a   : > { %224 = vperm.xlu0 %418, %v221_v2   ;;  %p468_p6 = pneg %p467_p5 }
  0x2c   : > { %p473_p13 = pnand %p472_p10, %p468_p6 }
  0x94   : > { %v214_v5 = vpop.permute.xlu0 %213 }
  0x95   : > { %v218_v7 = vperm.slane %v214_v5, %v217_v6 }
  0x97   : > { %v220_v10 = vmul.f32 %v218_v7, %v209_v8 }
  0x9c   : > { %v225_v9 = vpop.permute.xlu0 %224 }
  0x9d   : > { %v229_v11 = vperm.slane %v225_v9, %v217_v6 }
  0x9f   : > { %v231_v12 = vadd.f32 %v229_v11, %v220_v10 }
  0xa1   : > { %v232_v13 = vmax.f32 %v231_v12, 0.0 }
  0xa3   : > { %233 = vst [vmem:[%s206_s6] sm:$0xff] %v232_v13 }
  0xa4   : > { %476 = shalt.err (!%p473_p13)
}
  0xa5   : > { %356 = dma.vmem_to_hbm [thread:$0]  (%p606_p9), %s251_s7, 128, %s253_s8, %s235_s9  }
  0xa6 PF: > { %s264_s11 = sand.u32 1, %s511_s12   ;;  %p363_p0 = pnand %p340_p12, %p613_p11 }
  0xa7   : > { %s265_s28 = scalar_lea.sflag [#allocation4], %s264_s11 }
  0xa8   : > { %p364_p1 = pneg %p363_p0 }
  0xaa   : > { %506 = dma.done.wait (%p364_p1), %s265_s28, 128  }
  0xab   : > { %508 = vsyncadd (%p364_p1), %s265_s28, 4294967168  ;;  %s19_s17 = sadd.s32 1, %s531_s17   ;;  %s689_s12 = smov %s515_s13 }
  0xac   : > { %p16_p2 = scmp.ge.s32.totalorder %s19_s17, 4   ;;  %s690_s13 = smov %s519_s14 }
  0xad   : > { %s691_s14 = smov %s611_s26  ;;  %s692_s15 = smov %s527_s16 }
  0xae   : > { %s693_s16 = smov %s695_s20  ;;  %18 = sbr.rel (!%p16_p2) target bundleno = 6 (0x6), region = 77 }
  0xb3   :  { %271 = vsyncpa [#allocation3], 1 }
  0xb4   :  { %273 = vsyncpa [#allocation3 + $0x1], 1 }
  0xb5   :  { %274 = vsyncpa [#allocation4], 1 }
  0xb6   :  { %276 = vsyncpa [#allocation4 + $0x1], 1 }

</bundles_post_ra>
